<compile_context>
chip_gen: v6e
topology: v6e:2x2x1
jax: 0.10.0
libtpu: 0.0.40
codegen_flags: <defaults>
</compile_context>

<pallas_src>
import jax
import jax.numpy as jnp
from jax.experimental import pallas as pl
from jax.experimental.pallas import tpu as pltpu

# Lane-aligned stand-in for corona's MAX_YR_LEN (synthetic, small).
MAX_YR_LEN = 128

# Output bytes per grid step (per tile). ~8 MiB keeps the ~0.35 us per-step overhead to a few
# percent of the HBM-write time on every generation while double-buffering stays tiny vs VMEM.
_TARGET_TILE_BYTES = 8 << 20
# Double-buffered output budget (2 x tile must fit here, plus small inputs + Mosaic scratch).
_VMEM_OUT_BUDGET_BYTES = 24 << 20
# Explicit scoped-VMEM limit: valid on v5e/v6e (128 MiB physical) and v7x (64 MiB physical),
# and above v5e's 16 MiB default so large monthly tiles compile consistently everywhere.
_VMEM_LIMIT_BYTES = 32 << 20


def _selection_factor_kernel(sex_ref, fac_ref, out_ref):
    """Per-policy 2-way row select from the selection-factor table.

    sex_ref: (TB, 1) int32   -- sex column of mp_idx, values in {0, 1}
    fac_ref: (2, L)  float32 -- selection-factor table (annual or monthly), VMEM-resident
    out_ref: (TB, L) out_dtype

    NOTE: jnp.where maps any nonzero sex to row 1 (the module guarantees binary sex; an
    out-of-range sex silently selects row 1 instead of raising like torch fac[sex] would).
    Padded rows of a partial last batch tile read undefined sex values, but their outputs
    are dropped by Pallas on writeback -- do not add reductions over the padded region.
    """
    sex = sex_ref[...]                 # (TB, 1)
    fac0 = fac_ref[0:1, :]             # (1, L)
    fac1 = fac_ref[1:2, :]             # (1, L)
    # Single VPU broadcast-select; broadcasts to (TB, L).
    out_ref[...] = jnp.where(sex == 0, fac0, fac1).astype(out_ref.dtype)


def _sublane_granule(dtype):
    """Sublane-packing granule: 8 for 32-bit, 16 for 16-bit, 32 for 8-bit dtypes."""
    return max(8, 32 // jnp.dtype(dtype).itemsize)


def _pick_batch_tile(B, row_bytes, granule, tb_request=None):
    """Pick the batch-tile size from a byte target, clamped to VMEM and megacore-friendly."""
    # Rows per tile from the byte target / VMEM double-buffer budget.
    target_rows = max(granule, _TARGET_TILE_BYTES // row_bytes)
    vmem_cap_rows = max(granule, _VMEM_OUT_BUDGET_BYTES // (2 * row_bytes))
    tb = target_rows if tb_request is None else tb_request
    tb = min(tb, vmem_cap_rows, B)

    # Keep >=2 grid steps when possible so the ("parallel",) batch axis can shard
    # across v7x's two TensorCores (one TC alone cannot saturate the write stream).
    if B > granule:
        half = -(-B // 2)                       # ceil(B / 2)
        half = -(-half // granule) * granule    # round up to the packing granule
        tb = min(tb, half)

    if tb < B:
        # Second-minor block dim must be a multiple of the granule (>= 8) for clean,
        # unmasked stores; equal-to-full-dim tiles are exempt.
        tb = max(granule, (tb // granule) * granule)
        # Prefer a tile that evenly divides B (full last tile -> no masked vst on writeback).
        if B % tb != 0:
            c = tb
            floor = max(granule, tb // 2)
            while c >= floor:
                if B % c == 0:
                    tb = c
                    break
                c -= granule
    return tb


def selection_factor_forward(mp_idx, mp_val, fac, annual, *, tb=None, out_dtype=None):
    """Pallas implementation of SelectionFactor.forward(mp_idx, mp_val, annual)."""
    del mp_val  # SelectionFactor.forward ignores mp_val.

    # monthly_factor(): repeat-interleave each annual value 12x along time. Tiny one-off
    # parameter prep on a (2, MAX_YR_LEN) table; the hot path is the per-policy select below.
    # TODO(synk): if the downstream contract allows, skip materializing the 12x monthly
    # output entirely (emit (B, MAX_YR_LEN) and broadcast in the consumer) -- ~12x less HBM.
    table = fac if annual else jnp.repeat(fac, 12, axis=-1)
    B = mp_idx.shape[0]
    L = table.shape[-1]
    out_dtype = table.dtype if out_dtype is None else jnp.dtype(out_dtype)
    out_bytes = jnp.dtype(out_dtype).itemsize

    # Only the sex column feeds the kernel (4x less index traffic than the full mp_idx slab).
    sex = mp_idx[:, 0:1].astype(jnp.int32)  # (B, 1)

    granule = _sublane_granule(out_dtype)
    tb_eff = _pick_batch_tile(B, L * out_bytes, granule, tb_request=tb)
    grid = (pl.cdiv(B, tb_eff),)

    cost = pl.CostEstimate(
        flops=B * L,                      # one select per output element
        transcendentals=0,
        bytes_accessed=B * L * out_bytes + B * 4 + 2 * L * table.dtype.itemsize,
    )

    return pl.pallas_call(
        _selection_factor_kernel,
        out_shape=jax.ShapeDtypeStruct((B, L), out_dtype),
        grid_spec=pltpu.PrefetchScalarGridSpec(
            num_scalar_prefetch=0,
            grid=grid,
            in_specs=[
                # (TB, 1) sex column per grid step.
                pl.BlockSpec((tb_eff, 1), lambda i: (i, 0)),
                # Whole 2-row factor table, constant block index -> VMEM-resident.
                pl.BlockSpec((2, L), lambda i: (0, 0)),
            ],
            # Default double-buffering on the output; VMEM headroom is spent on a bigger tile.
            out_specs=pl.BlockSpec((tb_eff, L), lambda i: (i, 0)),
        ),
        compiler_params=pltpu.CompilerParams(
            dimension_semantics=("parallel",),
            vmem_limit_bytes=_VMEM_LIMIT_BYTES,
        ),
        cost_estimate=cost,
    )(sex, table)


if __name__ == "__main__":
    key = jax.random.PRNGKey(0)
    k_fac, k_sex, k_age = jax.random.split(key, 3)

    B, N_IDX = 16, 4
    # Deterministic parameter init (module __init__ would be zeros; use random
    # values so the row select is actually exercised).
    fac = jax.random.uniform(k_fac, (2, MAX_YR_LEN), dtype=jnp.float32)

    sex = jax.random.randint(k_sex, (B,), 0, 2, dtype=jnp.int32)
    age = jax.random.randint(k_age, (B,), 20, 60, dtype=jnp.int32)
    mp_idx = jnp.stack(
        [sex, age, jnp.zeros_like(sex), jnp.zeros_like(sex)], axis=1)  # (B, 4)
    mp_val = jnp.zeros((B, N_IDX), dtype=jnp.float32)

    out_monthly = selection_factor_forward(mp_idx, mp_val, fac, annual=False)
    out_annual = selection_factor_forward(mp_idx, mp_val, fac, annual=True)
    jax.block_until_ready((out_monthly, out_annual))

    # Pure-JAX reference (mirrors fac[sex, :] in the PyTorch forward).
    ref_annual = fac[sex, :]
    ref_monthly = jnp.repeat(fac, 12, axis=-1)[sex, :]
    assert out_annual.shape == (B, MAX_YR_LEN)
    assert out_monthly.shape == (B, 12 * MAX_YR_LEN)
    assert jnp.allclose(out_annual, ref_annual)
    assert jnp.allclose(out_monthly, ref_monthly)

    # Opt-in bf16 output path (halves HBM write traffic; NOT bit-exact with the f32 forward).
    out_bf16 = selection_factor_forward(mp_idx, mp_val, fac, annual=True,
                                        out_dtype=jnp.bfloat16)
    jax.block_until_ready(out_bf16)
    assert out_bf16.dtype == jnp.bfloat16
    assert jnp.allclose(out_bf16.astype(jnp.float32), ref_annual, atol=1e-2, rtol=1e-2)

    print("KERNEL_OK")
</pallas_src>

<mosaic_0001>
module attributes {stable_mosaic.version = 11 : i64} {
  func.func @_selection_factor_kernel(%arg0: i32, %arg1: memref<8x1xi32, #tpu.memory_space<vmem>>, %arg2: memref<2x1536xf32, #tpu.memory_space<vmem>>, %arg3: memref<8x1536xf32, #tpu.memory_space<vmem>>) attributes {dimension_semantics = [#tpu.dimension_semantics<parallel>], iteration_bounds = array<i64: 2>, scalar_prefetch = 0 : i64, scratch_operands = 0 : i64, tpu.core_type = #tpu.core_type<tc>, window_params = [{transform_indices = @transform_0, window_bounds = array<i64: 8, 1>}, {pipeline_mode = #tpu.pipeline_mode<synchronous>, transform_indices = @transform_1, window_bounds = array<i64: 2, 1536>}, {transform_indices = @transform_2, window_bounds = array<i64: 8, 1536>}]} {
    %c0 = arith.constant 0 : index
    %c0_0 = arith.constant 0 : index
    %0 = vector.load %arg1[%c0, %c0_0] : memref<8x1xi32, #tpu.memory_space<vmem>>, vector<8x1xi32>
    %c0_1 = arith.constant 0 : index
    %c0_2 = arith.constant 0 : index
    %1 = vector.load %arg2[%c0_1, %c0_2] : memref<2x1536xf32, #tpu.memory_space<vmem>>, vector<1x1536xf32>
    %c1 = arith.constant 1 : index
    %c0_3 = arith.constant 0 : index
    %2 = vector.load %arg2[%c1, %c0_3] : memref<2x1536xf32, #tpu.memory_space<vmem>>, vector<1x1536xf32>
    %c0_i32 = arith.constant 0 : i32
    %3 = vector.broadcast %c0_i32 : i32 to vector<8x1xi32>
    %4 = arith.cmpi eq, %0, %3 : vector<8x1xi32>
    %5 = vector.shape_cast %4 : vector<8x1xi1> to vector<8x1xi1>
    %6 = vector.broadcast %5 : vector<8x1xi1> to vector<8x1536xi1>
    %7 = vector.shape_cast %1 : vector<1x1536xf32> to vector<1x1536xf32>
    %8 = vector.broadcast %7 : vector<1x1536xf32> to vector<8x1536xf32>
    %9 = vector.shape_cast %2 : vector<1x1536xf32> to vector<1x1536xf32>
    %10 = vector.broadcast %9 : vector<1x1536xf32> to vector<8x1536xf32>
    %11 = arith.select %6, %8, %10 : vector<8x1536xi1>, vector<8x1536xf32>
    %c0_4 = arith.constant 0 : index
    %c0_5 = arith.constant 0 : index
    %12 = vector.load %arg3[%c0_4, %c0_5] : memref<8x1536xf32, #tpu.memory_space<vmem>>, vector<8x1536xf32>
    tpu.vector_store %arg3[%c0_4, %c0_5], %11 {strides = array<i32>} : memref<8x1536xf32, #tpu.memory_space<vmem>>, vector<8x1536xf32>,
    return
  }
  func.func @transform_0(%arg0: i32) -> (i32, i32) {
    %c0_i32 = arith.constant 0 : i32
    %c0_i32_0 = arith.constant 0 : i32
    return %arg0, %c0_i32 : i32, i32
  }
  func.func @transform_1(%arg0: i32) -> (i32, i32) {
    %c0_i32 = arith.constant 0 : i32
    %c0_i32_0 = arith.constant 0 : i32
    %c0_i32_1 = arith.constant 0 : i32
    return %c0_i32, %c0_i32_0 : i32, i32
  }
  func.func @transform_2(%arg0: i32) -> (i32, i32) {
    %c0_i32 = arith.constant 0 : i32
    %c0_i32_0 = arith.constant 0 : i32
    return %arg0, %c0_i32 : i32, i32
  }
}

</mosaic_0001>

<bundles_post_ra>
// kernel: tpu_custom_call.1
= control target key start
LH: loop header
LB: loop body
LE: loop exit
PB: predicated region body
PF: predicated region fallthrough
CT: control target
= control target key end

     0   :  { %7 = vsyncpa [#allocation3], 0  ;;  %s707_s0 = inlined_call_operand.vmem [shape: s32[16,1], index: 0, kind: input, shape index: {}]   ;;  %s708_s1 = inlined_call_operand.hbm [shape: f32[2,1536], index: 1, kind: input, shape index: {}]   ;;  %s709_s2 = inlined_call_operand.hbm [shape: f32[16,1536], index: 2, kind: output, shape index: {}]  }
   0x1   :  { %8 = vsyncpa [#allocation4], 0 }
   0x2   :  { %10 = vsyncpa [#allocation4 + $0x1], 0  ;;  %s574_s9 = smov 0   ;;  %s576_s10 = smov 0  }
   0x3   :  { %s578_s11 = smov 0   ;;  %s580_s12 = smov 0  }
   0x4 LB: > { %s595_s13 = sadd.s32 4294967295, %s554_s12   ;;  %s400_s14 = sadd.s32 4294967294, %s554_s12   ;;  %s554_s12 = sphi %s580_s12, %s717_s12   ;;  %s550_s11 = sphi %s578_s11, %s716_s11   ;;  %s546_s10 = sphi %s576_s10, %s715_s10   ;;  %s542_s9 = sphi %s574_s9, %s714_s9  }
   0x5   : > { %s599_s15 = sadd.s32 1, %s554_s12   ;;  %s70_s16 = sadd.s32 1, %s550_s11 }
   0x6   : > { %s67_s17 = ssub.s32 %s554_s12, %s599_s15  ;;  %p80_p0 = scmp.ne.s32.totalorder %s550_s11, %s546_s10 }
   0x7   : > { %p68_p1 = scmp.eq.s32.totalorder %s67_s17, 0  ;;  %p81_p2 = scmp.eq.s32.totalorder %s595_s13, 1 }
   0x8   : > { %p86_p3 = scmp.ne.s32.totalorder %s546_s10, %s542_s9  ;;  %p87_p4 = scmp.eq.s32.totalorder %s400_s14, 1 }
   0x9   : > { %s610_s18 = scalar_select %p68_p1, %s550_s11, %s70_s16  }
   0xa   : > { %p612_p5 = por %p81_p2, %p80_p0  ;;  %p616_p6 = por %p87_p4, %p86_p3 }
   0xb   : > { %p401_p7 = scmp.ge.s32.totalorder %s554_s12, 1  ;;  %p94_p8 = scmp.lt.s32.totalorder %s554_s12, 3 }
   0xc   : > { %s711_s20 = scalar_select %p616_p6, 1, 0 }
   0xd   : > { %p426_p9 = scmp.eq.s32.totalorder %s595_s13, 0  ;;  %p623_p10 = pnand %p401_p7, %p94_p8 }
   0xe   : > { %s556_s22 = smov [#allocation2]  }
   0xf   : > { %s107_s23 = sshll.u32 %s556_s22, 4  ;;  %p418_p11 = pneg %p623_p10  ;;  %s108_s23 = int_to_ptr.vmem [resolvable:$true] %s107_s23 }
  0x10   : > { %s475_s24 = scalar_lea.vmem %s108_s23, 384  ;;  %p483_p3 = scmp.lt.s32.totalorder %s108_s23, %s108_s23 }
  0x11   : > { %p419_p12 = pnand %p426_p9, %p418_p11  ;;  %p476_p0 = scmp.ne.s32.totalorder %s108_s23, %s475_s24 }
  0x12   : > { %p484_p4 = scmp.lt.s32.totalorder %s475_s24, %s475_s24 }
  0x13   : > { %p466_p13 = pneg %p419_p12 }
  0x14   : > { %p485_p6 = por %p484_p4, %p483_p3 }
  0x15   : > { %p478_p1 = pnand %p476_p0, %p466_p13 }
  0x17   : > { %p479_p2 = pneg %p478_p1 }
  0x19   : > { %p486_p7 = pnand %p485_p6, %p479_p2 }
  0x1b   : > { %489 = shalt.err (!%p486_p7)
}
  0x1c   : > { %421 = dma.hbm_to_vmem [thread:$0]  (!%p419_p12), %s708_s1, 384, %s108_s23, [#allocation3]  }
  0x1d   : > { %127 = sbr.rel (%p623_p10) target bundleno = 189 (0xbd), region = 28 }
  0x22   : > { %533 = dma.done.wait (%p426_p9), [#allocation3], 384  }
  0x23   : > { %535 = vsyncadd (%p426_p9), [#allocation3], 4294966912  ;;  %p148_p8 = scmp.lt.s32.totalorder %s595_s13, 1  ;;  %v557_v0 = vmov 0   ;;  %v168_v3 = vlaneseq  ;;  %s145_s4 = sand.u32 1, %s546_s10  }
  0x24   : > { %463 = vset.pattern.permute.xlu0 %v557_v0  ;;  %v153_v9 = vld [vmem:[#allocation2] ss:$2 sm:$0xff]  ;;  %s410_s5 = smul.u32 96, %s145_s4  ;;  %v155_v14 = vld [vmem:[#allocation2 + $0x10] ss:$2 sm:$0xf] }
  0x25   : > { %s149_s27 = scalar_select %p148_p8, %s595_s13, 1  ;;  %v169_v4 = vshrl.u32 %v168_v3, 7  ;;  %v157_v15 = vld [vmem:[#allocation2 + $0x1] ss:$2 sm:$0xff] }
  0x26   : > { %v159_v24 = vld [vmem:[#allocation2 + $0x11] ss:$2 sm:$0xf]  ;;  %s411_s6 = smul.u32 1536, %s595_s13  ;;  %s147_s7 = scalar_lea.vmem [#allocation5], %s410_s5 }
  0x27   : > { %s406_s28 = sshll.u32 %s149_s27, 3  ;;  %v170_v5 = vsub.s32 0, %v169_v4  ;;  %v174_v6 = vsub.s32 1, %v169_v4  ;;  %v178_v7 = vsub.s32 2, %v169_v4  ;;  %v182_v8 = vsub.s32 3, %v169_v4  ;;  %s329_s8 = sshll.u32 %s147_s7, 4  ;;  %s662_s8 = int_to_ptr.vmem [resolvable:$true] %s329_s8 }
  0x28   : > { %s151_s3 = scalar_lea.vmem %s707_s0, %s406_s28  ;;  %v186_v10 = vsub.s32 4, %v169_v4  ;;  %v190_v11 = vsub.s32 5, %v169_v4  ;;  %v194_v12 = vsub.s32 6, %v169_v4  ;;  %v198_v13 = vsub.s32 7, %v169_v4  ;;  %s660_s16 = scalar_lea.hbm %s709_s2, %s411_s6 }
  0x29   : > { %v152_v1 = vld [vmem:[%s151_s3] sm:$0xff]  ;;  %v171_v16 = vrot.slane %v153_v9, %v170_v5  ;;  %v175_v17 = vrot.slane %v153_v9, %v174_v6  ;;  %v179_v18 = vrot.slane %v153_v9, %v178_v7  ;;  %v183_v19 = vrot.slane %v153_v9, %v182_v8  ;;  %s315_s17 = scalar_lea.sflag [#allocation4], %s145_s4  ;;  %s490_s21 = scalar_lea.vmem %s662_s8, 1536 }
  0x2a   : > { %vm160_vm0 = vcmp.eq.s32.totalorder %v152_v1, 0  ;;  %v187_v20 = vrot.slane %v153_v9, %v186_v10  ;;  %v191_v21 = vrot.slane %v153_v9, %v190_v11  ;;  %v195_v22 = vrot.slane %v153_v9, %v194_v12  ;;  %p491_p6 = scmp.ne.s32.totalorder %s662_s8, %s490_s21  ;;  %s558_s22 = smov [#allocation5]  }
  0x2b   : > { %v161_v2 = vsel %vm160_vm0, 1, %v557_v0  ;;  %v199_v23 = vrot.slane %v153_v9, %v198_v13  ;;  %v203_v25 = vrot.slane %v155_v14, %v170_v5  ;;  %v207_v26 = vrot.slane %v155_v14, %v174_v6  ;;  %s494_s23 = sshll.u32 %s558_s22, 4  ;;  %s495_s23 = int_to_ptr.vmem [resolvable:$false] %s494_s23 }
  0x2c   : > { %163 = vperm.xlu0 %463, %v161_v2   ;;  %v211_v27 = vrot.slane %v155_v14, %v178_v7  ;;  %v215_v28 = vrot.slane %v155_v14, %v182_v8  ;;  %v233_v29 = vrot.slane %v157_v15, %v170_v5  ;;  %v237_v30 = vrot.slane %v157_v15, %v174_v6  ;;  %p492_p9 = pnand %p491_p6, %p612_p5  ;;  %s496_s24 = scalar_lea.vmem %s495_s23, 3072 }
  0x2d   : > { %v241_v31 = vrot.slane %v157_v15, %v178_v7  ;;  %v245_v32 = vrot.slane %v157_v15, %v182_v8  ;;  %v249_v33 = vrot.slane %v157_v15, %v186_v10  ;;  %v253_v34 = vrot.slane %v157_v15, %v190_v11  ;;  %p497_p11 = scmp.lt.s32.totalorder %s662_s8, %s495_s23  ;;  %p498_p12 = scmp.lt.s32.totalorder %s496_s24, %s490_s21 }
  0x2e   : > { %v257_v35 = vrot.slane %v157_v15, %v194_v12  ;;  %v261_v36 = vrot.slane %v157_v15, %v198_v13  ;;  %v265_v37 = vrot.slane %v159_v24, %v170_v5  ;;  %v269_v38 = vrot.slane %v159_v24, %v174_v6  ;;  %p493_p10 = pneg %p492_p9 }
  0x2f   : > { %v273_v39 = vrot.slane %v159_v24, %v178_v7  ;;  %v277_v40 = vrot.slane %v159_v24, %v182_v8  ;;  %p499_p13 = por %p498_p12, %p497_p11 }
  0x31   : > { %p500_p0 = pnand %p499_p13, %p493_p10 }
  0xa7   : > { %v164_v41 = vpop.permute.xlu0 %163 }
  0xa8   : > { %vm165_vm1 = vcmp.eq.s32.totalorder %v164_v41, 1 }
  0xa9   : > { %v290_v42 = vsel %vm165_vm1, %v171_v16, %v233_v29  ;;  %v291_v43 = vsel %vm165_vm1, %v175_v17, %v237_v30  ;;  %v292_v44 = vsel %vm165_vm1, %v179_v18, %v241_v31  ;;  %v293_v45 = vsel %vm165_vm1, %v183_v19, %v245_v32 }
  0xaa   : > { %v294_v46 = vsel %vm165_vm1, %v187_v20, %v249_v33  ;;  %v295_v47 = vsel %vm165_vm1, %v191_v21, %v253_v34  ;;  %v296_v48 = vsel %vm165_vm1, %v195_v22, %v257_v35  ;;  %v297_v49 = vsel %vm165_vm1, %v199_v23, %v261_v36  ;;  %302 = vst [vmem:[%s147_s7] sm:$0xff] %v290_v42 }
  0xab   : > { %303 = vst [vmem:[%s147_s7 + $0x8] sm:$0xff] %v291_v43  ;;  %304 = vst [vmem:[%s147_s7 + $0x10] sm:$0xff] %v292_v44  ;;  %v298_v50 = vsel %vm165_vm1, %v203_v25, %v265_v37  ;;  %v299_v51 = vsel %vm165_vm1, %v207_v26, %v269_v38  ;;  %v300_v52 = vsel %vm165_vm1, %v211_v27, %v273_v39 }
  0xac   : > { %305 = vst [vmem:[%s147_s7 + $0x18] sm:$0xff] %v293_v45  ;;  %v301_v53 = vsel %vm165_vm1, %v215_v28, %v277_v40  ;;  %306 = vst [vmem:[%s147_s7 + $0x20] sm:$0xff] %v294_v46 }
  0xad   : > { %307 = vst [vmem:[%s147_s7 + $0x28] sm:$0xff] %v295_v47  ;;  %308 = vst [vmem:[%s147_s7 + $0x30] sm:$0xff] %v296_v48 }
  0xae   : > { %309 = vst [vmem:[%s147_s7 + $0x38] sm:$0xff] %v297_v49  ;;  %310 = vst [vmem:[%s147_s7 + $0x40] sm:$0xff] %v298_v50 }
  0xaf   : > { %311 = vst [vmem:[%s147_s7 + $0x48] sm:$0xff] %v299_v51  ;;  %312 = vst [vmem:[%s147_s7 + $0x50] sm:$0xff] %v300_v52 }
  0xb0   : > { %313 = vst [vmem:[%s147_s7 + $0x58] sm:$0xff] %v301_v53 }
  0xb1   : > { %503 = shalt.err (!%p500_p0)
}
  0xb2   : > { %s504_s25 = scalar_lea.hbm %s660_s16, 1536  ;;  %s508_s28 = scalar_lea.hbm %s709_s2, 3072 }
  0xb3   : > { %p505_p1 = scmp.ne.s32.totalorder %s660_s16, %s504_s25  ;;  %p509_p4 = scmp.lt.s32.totalorder %s660_s16, %s709_s2 }
  0xb4   : > { %p510_p7 = scmp.lt.s32.totalorder %s508_s28, %s504_s25 }
  0xb5   : > { %p506_p2 = pnand %p505_p1, %p612_p5 }
  0xb6   : > { %p511_p8 = por %p510_p7, %p509_p4 }
  0xb7   : > { %p507_p3 = pneg %p506_p2 }
  0xb9   : > { %p512_p6 = pnand %p511_p8, %p507_p3 }
  0xbb   : > { %515 = shalt.err (!%p512_p6)
}
  0xbc   : > { %416 = dma.vmem_to_hbm [thread:$0]  (%p612_p5), %s662_s8, 1536, %s660_s16, %s315_s17  }
  0xbd PF: > { %p428_p9 = scmp.ge.s32.totalorder %s554_s12, 2  ;;  %s341_s3 = sand.u32 1, %s542_s9  }
  0xbe   : > { %p713_p10 = scmp.ne.s32.totalorder %s711_s20, 0  ;;  %s342_s4 = scalar_lea.sflag [#allocation4], %s341_s3 }
  0xc0   : > { %p423_p11 = pnand %p428_p9, %p713_p10 }
  0xc2   : > { %p424_p12 = pneg %p423_p11 }
  0xc4   : > { %537 = dma.done.wait (%p424_p12), %s342_s4, 1536  }
  0xc5   : > { %539 = vsyncadd (%p424_p12), %s342_s4, 4294965760  ;;  %p13_p13 = scmp.ge.s32.totalorder %s599_s15, 4   ;;  %s714_s9 = smov %s546_s10 }
  0xc6   : > { %s715_s10 = smov %s550_s11  ;;  %s716_s11 = smov %s610_s18 }
  0xc7   : > { %s717_s12 = smov %s599_s15  ;;  %15 = sbr.rel (!%p13_p13) target bundleno = 4 (0x4), region = 71 }
  0xcc   :  { %347 = vsyncpa [#allocation3], 1 }
  0xcd   :  { %349 = vsyncpa [#allocation3 + $0x1], 1 }
  0xce   :  { %350 = vsyncpa [#allocation4], 1 }
  0xcf   :  { %352 = vsyncpa [#allocation4 + $0x1], 1 }

</bundles_post_ra>
